<compile_context>
chip_gen: v6e
topology: v6e:2x2x1
jax: 0.10.0
libtpu: 0.0.40
codegen_flags: <defaults>
</compile_context>

<pallas_src>
import functools

import jax
import jax.numpy as jnp
from jax.experimental import pallas as pl
from jax.experimental.pallas import tpu as pltpu

LANE = 128
KH = KW = 7
PAD = 3


def _conv_stats_kernel(xp_ref, w_ref, y_ref, s_ref, ssq_ref, *, th, n_h, lout):
    """grid = (N,).  One batch element per step.

    xp_ref : (1, Hp, Wp*Cin) bf16  lane-dense reflect-padded image
    w_ref  : (KH, Wp*Cin, lout) bf16 banded conv weights (W folded into K,
             output pixels packed along lanes as w*Cout + o)
    y_ref  : (1, H, lout) bf16  lane-dense conv output
    s_ref/ssq_ref : (1, 1, lout) f32 per-image partial BN statistics
    """
    s_tot = jnp.zeros((1, lout), jnp.float32)
    q_tot = jnp.zeros((1, lout), jnp.float32)
    for ht in range(n_h):                       # static unroll: all slices are static
        r0 = ht * th
        acc = jnp.zeros((th, lout), jnp.float32)
        for i in range(KH):                     # 7 chained MXU dots, K = Wp*Cin
            lhs = xp_ref[0, r0 + i:r0 + i + th, :]          # (th, Wp*Cin) bf16
            acc += jnp.dot(lhs, w_ref[i], preferred_element_type=jnp.float32)
        y_ref[0, r0:r0 + th, :] = acc.astype(y_ref.dtype)   # bf16 intermediate
        # Stats from the f32 accumulator (not the bf16 store).
        s_tot = s_tot + jnp.sum(acc, axis=0, keepdims=True)
        q_tot = q_tot + jnp.sum(acc * acc, axis=0, keepdims=True)
    s_ref[...] = s_tot.reshape(1, 1, lout)
    ssq_ref[...] = q_tot.reshape(1, 1, lout)


def _bn_relu_kernel(y_ref, scale_ref, shift_ref, o_ref):
    y = y_ref[...].astype(jnp.float32)
    o_ref[...] = jnp.maximum(y * scale_ref[...] + shift_ref[...], 0.0)


def _pick_h_tile(H, lout, acc_bytes=64 * 1024):
    """Largest divisor of H whose f32 accumulator (th, lout) stays small; prefer
    multiples of 16 (bf16 sublane tile) so y stores are unmasked."""
    cap = max(1, acc_bytes // (lout * 4))
    best = 1
    for th in range(1, H + 1):
        if H % th or th > cap:
            continue
        if (th % 16 == 0, th % 8 == 0, th) > (best % 16 == 0, best % 8 == 0, best):
            best = th
    return best


def _pick_row_tile(R, target=4096):
    """Kernel-2 row tile: HBM-bound FMA -> big lane-dense blocks (<= ~4096 rows,
    keeping v7x's smaller VMEM in mind)."""
    if R <= target:
        return R
    for t in range(target, 7, -1):
        if R % t == 0 and t % 8 == 0:
            return t
    return R   # one full block is always legal (block == full dim)


def in_conv_forward(x, weight, bias, gamma, beta, eps=1e-5):
    """x: (N, Cin, H, W) f32; weight: (Cout, Cin, 7, 7). Returns (N, Cout, H, W) f32.

    `bias` is accepted for API parity but never added: a per-channel constant shift
    cancels exactly under batch-statistics BatchNorm (training-mode BN, as in the
    reference module's forward)."""
    del bias
    N, Cin, H, W = x.shape
    Cout = weight.shape[0]
    Hp, Wp = H + 2 * PAD, W + 2 * PAD
    Lreal = W * Cout
    Lout = ((Lreal + LANE - 1) // LANE) * LANE
    M = N * H * W

    th = _pick_h_tile(H, Lout)
    n_h = H // th

    # ---- glue: reflection pad, NCHW -> lane-dense (N, Hp, Wp*Cin) bf16 ----
    xp = jnp.pad(x, ((0, 0), (0, 0), (PAD, PAD), (PAD, PAD)), mode="reflect")
    xp = xp.transpose(0, 2, 3, 1).reshape(N, Hp, Wp * Cin).astype(jnp.bfloat16)

    # ---- glue: banded weights  wt[i, u*Cin+c, w*Cout+o] = weight[o, c, i, u-w] ----
    wk = weight.astype(jnp.float32).transpose(2, 3, 1, 0)            # (KH, KW, Cin, Cout)
    eyes = jnp.stack([jnp.eye(W, Wp, k=j, dtype=jnp.float32) for j in range(KW)])
    wt = jnp.einsum("jwu,ijco->iucwo", eyes, wk)                     # (KH, Wp, Cin, W, Cout)
    wt = wt.reshape(KH, Wp * Cin, Lreal)
    wt = jnp.pad(wt, ((0, 0), (0, 0), (0, Lout - Lreal))).astype(jnp.bfloat16)

    # ---- kernel 1: conv + per-image BN partial stats (lane-dense bf16 y) ----
    kernel1 = functools.partial(_conv_stats_kernel, th=th, n_h=n_h, lout=Lout)
    y, s, ssq = pl.pallas_call(
        kernel1,
        out_shape=(jax.ShapeDtypeStruct((N, H, Lout), jnp.bfloat16),
                   jax.ShapeDtypeStruct((N, 1, Lout), jnp.float32),
                   jax.ShapeDtypeStruct((N, 1, Lout), jnp.float32)),
        grid_spec=pltpu.PrefetchScalarGridSpec(
            num_scalar_prefetch=0,
            grid=(N,),
            in_specs=[
                pl.BlockSpec((1, Hp, Wp * Cin), lambda n: (n, 0, 0)),
                pl.BlockSpec((KH, Wp * Cin, Lout), lambda n: (0, 0, 0)),
            ],
            out_specs=(
                pl.BlockSpec((1, H, Lout), lambda n: (n, 0, 0)),
                pl.BlockSpec((1, 1, Lout), lambda n: (n, 0, 0)),
                pl.BlockSpec((1, 1, Lout), lambda n: (n, 0, 0)),
            )),
        compiler_params=pltpu.CompilerParams(
            dimension_semantics=("parallel",),       # megacore-shards N on v7x
            vmem_limit_bytes=32 * 1024 * 1024),
    )(xp, wt)

    # ---- glue: finalize training-mode BN (biased variance), fold into scale/shift ----
    s_c = s.reshape(N, Lout).sum(0)[:Lreal].reshape(W, Cout).sum(0)
    q_c = ssq.reshape(N, Lout).sum(0)[:Lreal].reshape(W, Cout).sum(0)
    mean = s_c / M
    var = jnp.maximum(q_c / M - mean * mean, 0.0)
    invstd = jax.lax.rsqrt(var + eps)
    scale_c = gamma.astype(jnp.float32) * invstd
    shift_c = beta.astype(jnp.float32) - mean * scale_c
    scale = jnp.pad(jnp.tile(scale_c, W), (0, Lout - Lreal)).reshape(1, Lout)
    shift = jnp.pad(jnp.tile(shift_c, W), (0, Lout - Lreal)).reshape(1, Lout)

    # ---- kernel 2: fused y*scale + shift, ReLU (lane-dense, large row tiles) ----
    R = N * H
    tm2 = _pick_row_tile(R)
    out2d = pl.pallas_call(
        _bn_relu_kernel,
        out_shape=jax.ShapeDtypeStruct((R, Lout), jnp.float32),
        grid_spec=pltpu.PrefetchScalarGridSpec(
            num_scalar_prefetch=0,
            grid=(R // tm2,),
            in_specs=[pl.BlockSpec((tm2, Lout), lambda i: (i, 0)),
                      pl.BlockSpec((1, Lout), lambda i: (0, 0)),
                      pl.BlockSpec((1, Lout), lambda i: (0, 0))],
            out_specs=pl.BlockSpec((tm2, Lout), lambda i: (i, 0))),
        compiler_params=pltpu.CompilerParams(
            dimension_semantics=("parallel",),
            vmem_limit_bytes=32 * 1024 * 1024),
    )(y.reshape(R, Lout), scale, shift)

    # ---- glue: drop lane padding, back to NCHW ----
    return out2d[:, :Lreal].reshape(N, H, W, Cout).transpose(0, 3, 1, 2)


def reference(x, weight, bias, gamma, beta, eps=1e-5):
    """Pure-JAX f32 reference matching the PyTorch forward (training-mode BN)."""
    xp = jnp.pad(x, ((0, 0), (0, 0), (PAD, PAD), (PAD, PAD)), mode="reflect")
    y = jax.lax.conv_general_dilated(
        xp, weight, window_strides=(1, 1), padding="VALID",
        dimension_numbers=("NCHW", "OIHW", "NCHW")) + bias[None, :, None, None]
    mean = y.mean(axis=(0, 2, 3), keepdims=True)
    var = y.var(axis=(0, 2, 3), keepdims=True)
    z = (y - mean) * jax.lax.rsqrt(var + eps) * gamma[None, :, None, None] \
        + beta[None, :, None, None]
    return jnp.maximum(z, 0.0)


if __name__ == "__main__":
    key = jax.random.PRNGKey(0)
    k_x, k_w, k_b, k_g, k_be = jax.random.split(key, 5)

    N, Cin, H, W = 2, 4, 16, 16
    Cout = 8

    x = jax.random.normal(k_x, (N, Cin, H, W), dtype=jnp.float32)
    weight = jax.random.normal(k_w, (Cout, Cin, 7, 7), dtype=jnp.float32) * 0.1
    bias = jax.random.normal(k_b, (Cout,), dtype=jnp.float32) * 0.1
    gamma = 1.0 + 0.1 * jax.random.normal(k_g, (Cout,), dtype=jnp.float32)
    beta = 0.1 * jax.random.normal(k_be, (Cout,), dtype=jnp.float32)

    out = jax.block_until_ready(in_conv_forward(x, weight, bias, gamma, beta))
    ref = jax.block_until_ready(reference(x, weight, bias, gamma, beta))

    assert out.shape == (N, Cout, H, W)
    # bf16 matmul operands + bf16 y intermediate -> compare against the f32 reference at
    # bf16-level tolerance.
    assert jnp.allclose(out, ref, atol=3e-2, rtol=3e-2)

    print("KERNEL_OK")
</pallas_src>

<mosaic_0001>
module attributes {stable_mosaic.version = 11 : i64} {
  func.func @_conv_stats_kernel(%arg0: i32, %arg1: memref<1x22x88xbf16, #tpu.memory_space<vmem>>, %arg2: memref<7x88x128xbf16, #tpu.memory_space<vmem>>, %arg3: memref<1x16x128xbf16, #tpu.memory_space<vmem>>, %arg4: memref<1x1x128xf32, #tpu.memory_space<vmem>>, %arg5: memref<1x1x128xf32, #tpu.memory_space<vmem>>) attributes {dimension_semantics = [#tpu.dimension_semantics<parallel>], iteration_bounds = array<i64: 2>, scalar_prefetch = 0 : i64, scratch_operands = 0 : i64, tpu.core_type = #tpu.core_type<tc>, window_params = [{transform_indices = @transform_0, window_bounds = array<i64: 1, 22, 88>}, {pipeline_mode = #tpu.pipeline_mode<synchronous>, transform_indices = @transform_1, window_bounds = array<i64: 7, 88, 128>}, {transform_indices = @transform_2, window_bounds = array<i64: 1, 16, 128>}, {transform_indices = @transform_3, window_bounds = array<i64: 1, 1, 128>}, {transform_indices = @transform_4, window_bounds = array<i64: 1, 1, 128>}]} {
    %cst = arith.constant 0.000000e+00 : f32
    %0 = vector.broadcast %cst : f32 to vector<1x128xf32>
    %cst_0 = arith.constant 0.000000e+00 : f32
    %1 = vector.broadcast %cst_0 : f32 to vector<1x128xf32>
    %cst_1 = arith.constant 0.000000e+00 : f32
    %2 = vector.broadcast %cst_1 : f32 to vector<16x128xf32>
    %c0 = arith.constant 0 : index
    %c0_2 = arith.constant 0 : index
    %c0_3 = arith.constant 0 : index
    %3 = vector.load %arg1[%c0, %c0_2, %c0_3] : memref<1x22x88xbf16, #tpu.memory_space<vmem>>, vector<1x16x88xbf16>
    %4 = vector.shape_cast %3 : vector<1x16x88xbf16> to vector<16x88xbf16>
    %c0_4 = arith.constant 0 : index
    %c0_5 = arith.constant 0 : index
    %c0_6 = arith.constant 0 : index
    %5 = vector.load %arg2[%c0_4, %c0_5, %c0_6] : memref<7x88x128xbf16, #tpu.memory_space<vmem>>, vector<1x88x128xbf16>
    %6 = vector.shape_cast %5 : vector<1x88x128xbf16> to vector<88x128xbf16>
    %cst_7 = arith.constant dense<0.000000e+00> : vector<16x128xf32>
    %7 = tpu.matmul %4, %6, %cst_7 {dimension_numbers = #tpu.dot_dimension_numbers<[1], [0], [0], [1], [0, 0, 1, 1], [], []>} : vector<16x88xbf16>, vector<88x128xbf16>, vector<16x128xf32> -> vector<16x128xf32>
    %8 = arith.addf %2, %7 : vector<16x128xf32>
    %c0_8 = arith.constant 0 : index
    %c1 = arith.constant 1 : index
    %c0_9 = arith.constant 0 : index
    %9 = vector.load %arg1[%c0_8, %c1, %c0_9] : memref<1x22x88xbf16, #tpu.memory_space<vmem>>, vector<1x16x88xbf16>
    %10 = vector.shape_cast %9 : vector<1x16x88xbf16> to vector<16x88xbf16>
    %c1_10 = arith.constant 1 : index
    %c0_11 = arith.constant 0 : index
    %c0_12 = arith.constant 0 : index
    %11 = vector.load %arg2[%c1_10, %c0_11, %c0_12] : memref<7x88x128xbf16, #tpu.memory_space<vmem>>, vector<1x88x128xbf16>
    %12 = vector.shape_cast %11 : vector<1x88x128xbf16> to vector<88x128xbf16>
    %cst_13 = arith.constant dense<0.000000e+00> : vector<16x128xf32>
    %13 = tpu.matmul %10, %12, %cst_13 {dimension_numbers = #tpu.dot_dimension_numbers<[1], [0], [0], [1], [0, 0, 1, 1], [], []>} : vector<16x88xbf16>, vector<88x128xbf16>, vector<16x128xf32> -> vector<16x128xf32>
    %14 = arith.addf %8, %13 : vector<16x128xf32>
    %c0_14 = arith.constant 0 : index
    %c2 = arith.constant 2 : index
    %c0_15 = arith.constant 0 : index
    %15 = vector.load %arg1[%c0_14, %c2, %c0_15] : memref<1x22x88xbf16, #tpu.memory_space<vmem>>, vector<1x16x88xbf16>
    %16 = vector.shape_cast %15 : vector<1x16x88xbf16> to vector<16x88xbf16>
    %c2_16 = arith.constant 2 : index
    %c0_17 = arith.constant 0 : index
    %c0_18 = arith.constant 0 : index
    %17 = vector.load %arg2[%c2_16, %c0_17, %c0_18] : memref<7x88x128xbf16, #tpu.memory_space<vmem>>, vector<1x88x128xbf16>
    %18 = vector.shape_cast %17 : vector<1x88x128xbf16> to vector<88x128xbf16>
    %cst_19 = arith.constant dense<0.000000e+00> : vector<16x128xf32>
    %19 = tpu.matmul %16, %18, %cst_19 {dimension_numbers = #tpu.dot_dimension_numbers<[1], [0], [0], [1], [0, 0, 1, 1], [], []>} : vector<16x88xbf16>, vector<88x128xbf16>, vector<16x128xf32> -> vector<16x128xf32>
    %20 = arith.addf %14, %19 : vector<16x128xf32>
    %c0_20 = arith.constant 0 : index
    %c3 = arith.constant 3 : index
    %c0_21 = arith.constant 0 : index
    %21 = vector.load %arg1[%c0_20, %c3, %c0_21] : memref<1x22x88xbf16, #tpu.memory_space<vmem>>, vector<1x16x88xbf16>
    %22 = vector.shape_cast %21 : vector<1x16x88xbf16> to vector<16x88xbf16>
    %c3_22 = arith.constant 3 : index
    %c0_23 = arith.constant 0 : index
    %c0_24 = arith.constant 0 : index
    %23 = vector.load %arg2[%c3_22, %c0_23, %c0_24] : memref<7x88x128xbf16, #tpu.memory_space<vmem>>, vector<1x88x128xbf16>
    %24 = vector.shape_cast %23 : vector<1x88x128xbf16> to vector<88x128xbf16>
    %cst_25 = arith.constant dense<0.000000e+00> : vector<16x128xf32>
    %25 = tpu.matmul %22, %24, %cst_25 {dimension_numbers = #tpu.dot_dimension_numbers<[1], [0], [0], [1], [0, 0, 1, 1], [], []>} : vector<16x88xbf16>, vector<88x128xbf16>, vector<16x128xf32> -> vector<16x128xf32>
    %26 = arith.addf %20, %25 : vector<16x128xf32>
    %c0_26 = arith.constant 0 : index
    %c4 = arith.constant 4 : index
    %c0_27 = arith.constant 0 : index
    %27 = vector.load %arg1[%c0_26, %c4, %c0_27] : memref<1x22x88xbf16, #tpu.memory_space<vmem>>, vector<1x16x88xbf16>
    %28 = vector.shape_cast %27 : vector<1x16x88xbf16> to vector<16x88xbf16>
    %c4_28 = arith.constant 4 : index
    %c0_29 = arith.constant 0 : index
    %c0_30 = arith.constant 0 : index
    %29 = vector.load %arg2[%c4_28, %c0_29, %c0_30] : memref<7x88x128xbf16, #tpu.memory_space<vmem>>, vector<1x88x128xbf16>
    %30 = vector.shape_cast %29 : vector<1x88x128xbf16> to vector<88x128xbf16>
    %cst_31 = arith.constant dense<0.000000e+00> : vector<16x128xf32>
    %31 = tpu.matmul %28, %30, %cst_31 {dimension_numbers = #tpu.dot_dimension_numbers<[1], [0], [0], [1], [0, 0, 1, 1], [], []>} : vector<16x88xbf16>, vector<88x128xbf16>, vector<16x128xf32> -> vector<16x128xf32>
    %32 = arith.addf %26, %31 : vector<16x128xf32>
    %c0_32 = arith.constant 0 : index
    %c5 = arith.constant 5 : index
    %c0_33 = arith.constant 0 : index
    %33 = vector.load %arg1[%c0_32, %c5, %c0_33] : memref<1x22x88xbf16, #tpu.memory_space<vmem>>, vector<1x16x88xbf16>
    %34 = vector.shape_cast %33 : vector<1x16x88xbf16> to vector<16x88xbf16>
    %c5_34 = arith.constant 5 : index
    %c0_35 = arith.constant 0 : index
    %c0_36 = arith.constant 0 : index
    %35 = vector.load %arg2[%c5_34, %c0_35, %c0_36] : memref<7x88x128xbf16, #tpu.memory_space<vmem>>, vector<1x88x128xbf16>
    %36 = vector.shape_cast %35 : vector<1x88x128xbf16> to vector<88x128xbf16>
    %cst_37 = arith.constant dense<0.000000e+00> : vector<16x128xf32>
    %37 = tpu.matmul %34, %36, %cst_37 {dimension_numbers = #tpu.dot_dimension_numbers<[1], [0], [0], [1], [0, 0, 1, 1], [], []>} : vector<16x88xbf16>, vector<88x128xbf16>, vector<16x128xf32> -> vector<16x128xf32>
    %38 = arith.addf %32, %37 : vector<16x128xf32>
    %c0_38 = arith.constant 0 : index
    %c6 = arith.constant 6 : index
    %c0_39 = arith.constant 0 : index
    %39 = vector.load %arg1[%c0_38, %c6, %c0_39] : memref<1x22x88xbf16, #tpu.memory_space<vmem>>, vector<1x16x88xbf16>
    %40 = vector.shape_cast %39 : vector<1x16x88xbf16> to vector<16x88xbf16>
    %c6_40 = arith.constant 6 : index
    %c0_41 = arith.constant 0 : index
    %c0_42 = arith.constant 0 : index
    %41 = vector.load %arg2[%c6_40, %c0_41, %c0_42] : memref<7x88x128xbf16, #tpu.memory_space<vmem>>, vector<1x88x128xbf16>
    %42 = vector.shape_cast %41 : vector<1x88x128xbf16> to vector<88x128xbf16>
    %cst_43 = arith.constant dense<0.000000e+00> : vector<16x128xf32>
    %43 = tpu.matmul %40, %42, %cst_43 {dimension_numbers = #tpu.dot_dimension_numbers<[1], [0], [0], [1], [0, 0, 1, 1], [], []>} : vector<16x88xbf16>, vector<88x128xbf16>, vector<16x128xf32> -> vector<16x128xf32>
    %44 = arith.addf %38, %43 : vector<16x128xf32>
    %45 = arith.truncf %44 : vector<16x128xf32> to vector<16x128xbf16>
    %c0_44 = arith.constant 0 : index
    %c0_45 = arith.constant 0 : index
    %c0_46 = arith.constant 0 : index
    %46 = vector.load %arg3[%c0_44, %c0_45, %c0_46] : memref<1x16x128xbf16, #tpu.memory_space<vmem>>, vector<1x16x128xbf16>
    %47 = vector.shape_cast %46 : vector<1x16x128xbf16> to vector<16x128xbf16>
    %48 = vector.shape_cast %45 : vector<16x128xbf16> to vector<1x16x128xbf16>
    tpu.vector_store %arg3[%c0_44, %c0_45, %c0_46], %48 {strides = array<i32>} : memref<1x16x128xbf16, #tpu.memory_space<vmem>>, vector<1x16x128xbf16>,
    %cst_47 = arith.constant dense<0.000000e+00> : vector<128xf32>
    %49 = vector.multi_reduction <add>, %44, %cst_47 [0] : vector<16x128xf32> to vector<128xf32>
    %50 = vector.shape_cast %49 : vector<128xf32> to vector<1x128xf32>
    %51 = arith.addf %0, %50 : vector<1x128xf32>
    %52 = arith.mulf %44, %44 : vector<16x128xf32>
    %cst_48 = arith.constant dense<0.000000e+00> : vector<128xf32>
    %53 = vector.multi_reduction <add>, %52, %cst_48 [0] : vector<16x128xf32> to vector<128xf32>
    %54 = vector.shape_cast %53 : vector<128xf32> to vector<1x128xf32>
    %55 = arith.addf %1, %54 : vector<1x128xf32>
    %56 = vector.shape_cast %51 : vector<1x128xf32> to vector<1x1x128xf32>
    %c0_49 = arith.constant 0 : index
    %c0_50 = arith.constant 0 : index
    %c0_51 = arith.constant 0 : index
    %57 = vector.load %arg4[%c0_49, %c0_50, %c0_51] : memref<1x1x128xf32, #tpu.memory_space<vmem>>, vector<1x1x128xf32>
    tpu.vector_store %arg4[%c0_49, %c0_50, %c0_51], %56 {strides = array<i32>} : memref<1x1x128xf32, #tpu.memory_space<vmem>>, vector<1x1x128xf32>,
    %58 = vector.shape_cast %55 : vector<1x128xf32> to vector<1x1x128xf32>
    %c0_52 = arith.constant 0 : index
    %c0_53 = arith.constant 0 : index
    %c0_54 = arith.constant 0 : index
    %59 = vector.load %arg5[%c0_52, %c0_53, %c0_54] : memref<1x1x128xf32, #tpu.memory_space<vmem>>, vector<1x1x128xf32>
    tpu.vector_store %arg5[%c0_52, %c0_53, %c0_54], %58 {strides = array<i32>} : memref<1x1x128xf32, #tpu.memory_space<vmem>>, vector<1x1x128xf32>,
    return
  }
  func.func @transform_0(%arg0: i32) -> (i32, i32, i32) {
    %c0_i32 = arith.constant 0 : i32
    %c0_i32_0 = arith.constant 0 : i32
    %c0_i32_1 = arith.constant 0 : i32
    return %arg0, %c0_i32, %c0_i32_0 : i32, i32, i32
  }
  func.func @transform_1(%arg0: i32) -> (i32, i32, i32) {
    %c0_i32 = arith.constant 0 : i32
    %c0_i32_0 = arith.constant 0 : i32
    %c0_i32_1 = arith.constant 0 : i32
    %c0_i32_2 = arith.constant 0 : i32
    return %c0_i32, %c0_i32_0, %c0_i32_1 : i32, i32, i32
  }
  func.func @transform_2(%arg0: i32) -> (i32, i32, i32) {
    %c0_i32 = arith.constant 0 : i32
    %c0_i32_0 = arith.constant 0 : i32
    %c0_i32_1 = arith.constant 0 : i32
    return %arg0, %c0_i32, %c0_i32_0 : i32, i32, i32
  }
  func.func @transform_3(%arg0: i32) -> (i32, i32, i32) {
    %c0_i32 = arith.constant 0 : i32
    %c0_i32_0 = arith.constant 0 : i32
    %c0_i32_1 = arith.constant 0 : i32
    return %arg0, %c0_i32, %c0_i32_0 : i32, i32, i32
  }
  func.func @transform_4(%arg0: i32) -> (i32, i32, i32) {
    %c0_i32 = arith.constant 0 : i32
    %c0_i32_0 = arith.constant 0 : i32
    %c0_i32_1 = arith.constant 0 : i32
    return %arg0, %c0_i32, %c0_i32_0 : i32, i32, i32
  }
}

</mosaic_0001>

<bundles_post_ra>
// kernel: tpu_custom_call.1
= control target key start
LH: loop header
LB: loop body
LE: loop exit
PB: predicated region body
PF: predicated region fallthrough
CT: control target
= control target key end

     0   :  { %10 = vsyncpa [#allocation3], 0  ;;  %s2021_s0 = inlined_call_operand.vmem [shape: bf16[2,22,88], index: 0, kind: input, shape index: {}]   ;;  %s2022_s1 = inlined_call_operand.hbm [shape: bf16[7,88,128], index: 1, kind: input, shape index: {}]   ;;  %s2023_s2 = inlined_call_operand.hbm [shape: bf16[2,16,128], index: 2, kind: output, shape index: {0}]   ;;  %s2024_s3 = inlined_call_operand.hbm [shape: f32[2,1,128], index: 3, kind: output, shape index: {1}]   ;;  %s2025_s4 = inlined_call_operand.hbm [shape: f32[2,1,128], index: 4, kind: output, shape index: {2}]  }
   0x1   :  { %11 = vsyncpa [#allocation4], 0 }
   0x2   :  { %13 = vsyncpa [#allocation4 + $0x1], 0 }
   0x3   :  { %14 = vsyncpa [#allocation7], 0 }
   0x4   :  { %16 = vsyncpa [#allocation7 + $0x1], 0  ;;  %s1720_s15 = smov 0   ;;  %s1722_s16 = smov 0  }
   0x5   :  { %s1724_s17 = smov 0   ;;  %s1726_s18 = smov 0  }
   0x6 LB: > { %s1741_s19 = sadd.s32 4294967295, %s1683_s18   ;;  %s1179_s20 = sadd.s32 4294967294, %s1683_s18   ;;  %s1683_s18 = sphi %s1726_s18, %s2033_s18   ;;  %s1679_s17 = sphi %s1724_s17, %s2032_s17   ;;  %s1675_s16 = sphi %s1722_s16, %s2031_s16   ;;  %s1671_s15 = sphi %s1720_s15, %s2030_s15  }
   0x7   : > { %s1745_s21 = sadd.s32 1, %s1683_s18   ;;  %s76_s22 = sadd.s32 1, %s1679_s17 }
   0x8   : > { %s73_s23 = ssub.s32 %s1683_s18, %s1745_s21  ;;  %p86_p0 = scmp.ne.s32.totalorder %s1679_s17, %s1675_s16 }
   0x9   : > { %p74_p1 = scmp.eq.s32.totalorder %s73_s23, 0  ;;  %p87_p2 = scmp.eq.s32.totalorder %s1741_s19, 1 }
   0xa   : > { %p92_p3 = scmp.ne.s32.totalorder %s1675_s16, %s1671_s15  ;;  %p93_p4 = scmp.eq.s32.totalorder %s1179_s20, 1 }
   0xb   : > { %s1758_s24 = scalar_select %p74_p1, %s1679_s17, %s76_s22  }
   0xc   : > { %p1760_p5 = por %p87_p2, %p86_p0  ;;  %p1764_p6 = por %p93_p4, %p92_p3 }
   0xd   : > { %p1180_p7 = scmp.ge.s32.totalorder %s1683_s18, 1  ;;  %p152_p8 = scmp.lt.s32.totalorder %s1683_s18, 3 }
   0xe   : > { %s2027_s26 = scalar_select %p1764_p6, 1, 0 }
   0xf   : > { %p1446_p9 = scmp.eq.s32.totalorder %s1741_s19, 0  ;;  %p1771_p10 = pnand %p1180_p7, %p152_p8 }
  0x10   : > { %s1685_s28 = smov [#allocation2]  }
  0x11   : > { %s164_s29 = sshll.u32 %s1685_s28, 4  ;;  %p1432_p11 = pneg %p1771_p10  ;;  %s165_s29 = int_to_ptr.vmem [resolvable:$true] %s164_s29 }
  0x12   : > { %s1548_s30 = scalar_lea.vmem %s165_s29, 4928  ;;  %p1556_p3 = scmp.lt.s32.totalorder %s165_s29, %s165_s29 }
  0x13   : > { %p1433_p12 = pnand %p1446_p9, %p1432_p11  ;;  %p1549_p0 = scmp.ne.s32.totalorder %s165_s29, %s1548_s30 }
  0x14   : > { %p1557_p4 = scmp.lt.s32.totalorder %s1548_s30, %s1548_s30 }
  0x15   : > { %p1539_p13 = pneg %p1433_p12 }
  0x16   : > { %p1558_p6 = por %p1557_p4, %p1556_p3 }
  0x17   : > { %p1551_p1 = pnand %p1549_p0, %p1539_p13 }
  0x19   : > { %p1552_p2 = pneg %p1551_p1 }
  0x1b   : > { %p1559_p7 = pnand %p1558_p6, %p1552_p2 }
  0x1d   : > { %1562 = shalt.err (!%p1559_p7)
}
  0x1e   : > { %s1686_s5 = smov 64   ;;  %s1687_s6 = smov 4  }
  0x1f   : > { %1435 = dma.hbm_to_vmem [thread:$0]  (!%p1433_p12), %s2022_s1, 4928, %s165_s29, [#allocation3], %s1686_s5, %s1686_s5, %s1687_s6  }
  0x20   : > { %188 = sbr.rel (%p1771_p10) target bundleno = 398 (0x18e), region = 28 }
  0x25   : > { %1658 = dma.done.wait (%p1446_p9), [#allocation3], 4928  }
  0x26   : > { %1660 = vsyncadd (%p1446_p9), [#allocation3], 4294962368  ;;  %v1688_v0 = vmov 0.0   ;;  %vm1689_vm0 = vmmov 0   ;;  %p222_p6 = scmp.lt.s32.totalorder %s1741_s19, 1  ;;  %vm312_vm1 = vcmask 1043456  }
  0x27   : > { %1309 = vmatprep.subr.bf16.mxu0 %v1688_v0  ;;  %1325 = vmatprep.subr.bf16.mxu1 %v1688_v0  ;;  %v1488_v1 = vld [vmem:[#allocation2 + $0x54] ss:$0 sps:$4 sm:$0xff]   ;;  %v1489_v2 = vld [vmem:[#allocation2 + $0x28] ss:$0 sps:$4 sm:$0xff]   ;;  %v1490_v5 = vld [vmem:[#allocation2 + $0x4c] sm:$0xff]   ;;  %vm308_vm3 = vcmask 719872  }
  0x28   : > { %1321 = vmatprep.mubr.msk.bf16.mxu0 %vm1689_vm0, %v1688_v0  ;;  %1337 = vmatprep.mubr.msk.bf16.mxu1 %vm1689_vm0, %v1688_v0  ;;  %s223_s9 = scalar_select %p222_p6, %s1741_s19, 1  ;;  %v314_v3 = vsel %vm312_vm1, %v1488_v1, 0  ;;  %v393_v4 = vsel %vm312_vm1, %v1489_v2, 0  ;;  %v1491_v6 = vld [vmem:[#allocation2 + $0x20] sm:$0xff]   ;;  %v1493_v8 = vld [vmem:[#allocation2 + $0x18] sm:$0xff]   ;;  %v1495_v12 = vld [vmem:[#allocation2 + $0x10] sm:$0xff]  }
  0x29   : > { %1310 = vmatpush3.bf16.msra.mxu0 %v314_v3  ;;  %1326 = vmatpush3.bf16.msra.mxu1 %v393_v4  ;;  %v1492_v7 = vld [vmem:[#allocation2 + $0x44] sm:$0xff]   ;;  %v1494_v9 = vld [vmem:[#allocation2 + $0x3c] sm:$0xff]   ;;  %v1496_v15 = vld [vmem:[#allocation2 + $0x34] sm:$0xff]   ;;  %vm262_vm2 = vsmask.f32 7424  ;;  %vm452_vm4 = vcmask 1046528  }
  0x2a   : > { %1311 = vmatprep.subr.bf16.mxu0 %v1688_v0  ;;  %s1421_s10 = smul.u32 12, %s223_s9  ;;  %1327 = vmatprep.subr.bf16.mxu1 %v1688_v0  ;;  %v1497_v19 = vld [vmem:[#allocation2 + $0x8] sm:$0xff]   ;;  %v1499_v22 = vld [vmem:[#allocation2] sm:$0xff]   ;;  %v1504_v30 = vld [vmem:[#allocation2 + $0x78] sm:$0xff]   ;;  %vm554_vm5 = vsmask.f32 6400 }
  0x2b   : > { %v1498_v21 = vld [vmem:[#allocation2 + $0x2c] sm:$0xff]   ;;  %v1502_v25 = vld [vmem:[#allocation2 + $0x80] ss:$0 sps:$4 sm:$0xff]   ;;  %v1505_v31 = vld [vmem:[#allocation2 + $0xa4] sm:$0xff]   ;;  %vm670_vm6 = vcmask 1045504   ;;  %vm888_vm8 = vcmask 1044480  }
  0x2c   : > { %s1804_s13 = scalar_lea.vmem %s2021_s0, %s1421_s10  ;;  %v1503_v26 = vld [vmem:[#allocation2 + $0xac] ss:$0 sps:$4 sm:$0xff]   ;;  %v493_v28 = vsel %vm312_vm1, %v1502_v25, 0  ;;  %v1506_v34 = vld [vmem:[#allocation2 + $0x70] sm:$0xff]   ;;  %v1507_v36 = vld [vmem:[#allocation2 + $0x9c] sm:$0xff]   ;;  %s1902_s14 = sand.u32 1, %s1675_s16  }
  0x2d   : > { %1312 = vmatpush3.bf16.msra.mxu0 %v1490_v5  ;;  %1328 = vmatpush3.bf16.msra.mxu1 %v1491_v6  ;;  %v228_v10 = vld [vmem:[%s1804_s13] sm:$0xf]  ;;  %v1809_v11 = vld [vmem:[%s1804_s13 + $0x4] sm:$0xf]  ;;  %v609_v29 = vsel %vm312_vm1, %v1503_v26, 0  ;;  %v1508_v37 = vld [vmem:[#allocation2 + $0x68] sm:$0xff]  }
  0x2e   : > { %1313 = vmatprep.subr.bf16.mxu0 %v1688_v0  ;;  %1329 = vmatprep.subr.bf16.mxu1 %v1688_v0  ;;  %v1187_v13 = vcombine.low %v228_v10, %v1809_v11  ;;  %v1814_v14 = vld [vmem:[%s1804_s13 + $0x8] ss:$0 sps:$4 sm:$0x11]   ;;  %v436_v32 = vld [vmem:[%s1804_s13] sm:$0xe]  ;;  %v1509_v38 = vld [vmem:[#allocation2 + $0x94] sm:$0xff]  }
  0x2f   : > { %v271_v18 = vshll.u32 %v1814_v14, 16  ;;  %v1836_v33 = vld [vmem:[%s1804_s13 + $0x8] ss:$0 sps:$4 sm:$0x33]   ;;  %v1203_v35 = vcombine.low %v436_v32, %v1809_v11  ;;  %v1510_v43 = vld [vmem:[#allocation2 + $0x60] sm:$0xff]   ;;  %v1511_v44 = vld [vmem:[#allocation2 + $0x8c] sm:$0xff]  }
  0x30   : > { %v266_v16 = vshll.u32 %v1187_v13, 16  ;;  %v264_v17 = vshrl.u32 %v1187_v13, 16  ;;  %v564_v41 = vshrl.u32 %v1836_v33, 16  ;;  %v567_v42 = vshll.u32 %v1836_v33, 16  ;;  %v1512_v49 = vld [vmem:[#allocation2 + $0x58] sm:$0xff]   ;;  %v1513_v50 = vld [vmem:[#allocation2 + $0x84] sm:$0xff]  }
  0x31   : > { %1314 = vmatpush3.bf16.msra.mxu0 %v1492_v7  ;;  %1330 = vmatpush3.bf16.msra.mxu1 %v1493_v8  ;;  %v273_v24 = vrot.slane %v271_v18, 1  ;;  %v556_v39 = vshrl.u32 %v1203_v35, 16  ;;  %v559_v40 = vshll.u32 %v1203_v35, 16  ;;  %v453_v51 = vrot.slane %v1203_v35, 1  ;;  %v1515_v53 = vld [vmem:[#allocation2 + $0xd8] ss:$0 sps:$4 sm:$0xff]  }
  0x32   : > { %1315 = vmatprep.subr.bf16.mxu0 %v1688_v0  ;;  %1331 = vmatprep.subr.bf16.mxu1 %v1688_v0  ;;  %v268_v20 = vrot.slane %v266_v16, 1  ;;  %v566_v47 = vrot.slane %v564_v41, 1  ;;  %v569_v48 = vrot.slane %v567_v42, 2  ;;  %v454_v52 = vrot.slane %v1814_v14, 1  ;;  %v1517_v56 = vld [vmem:[#allocation2 + $0x104] ss:$0 sps:$4 sm:$0xff]  }
  0x33   : > { %v558_v45 = vrot.slane %v556_v39, 1  ;;  %v561_v46 = vrot.slane %v559_v40, 2  ;;  %v1851_v57 = vld [vmem:[%s1804_s13] sm:$0x8]  ;;  %v711_v60 = vsel %vm312_vm1, %v1515_v53, 0  ;;  %v827_v62 = vsel %vm312_vm1, %v1517_v56, 0 }
  0x34   : > { %v269_v23 = vor.u32 %v268_v20, %v264_v17  ;;  %v570_v55 = vor.u32 %v569_v48, %v566_v47  ;;  %v455_v58 = vsel %vm452_vm4, %v453_v51, %v454_v52  ;;  %v1235_v59 = vcombine.low %v1851_v57, %v1809_v11  ;;  %v1518_v63 = vld [vmem:[#allocation2 + $0xd0] sm:$0xff]   ;;  %v1519_v1 = vld [vmem:[#allocation2 + $0xfc] sm:$0xff]   ;;  %v1520_v3 = vld [vmem:[#allocation2 + $0xc8] sm:$0xff]   ;;  %s1185_s22 = sshll.u32 %s1902_s14, 3  ;;  %s1254_s23 = sshll.u32 %s1741_s19, 7 }
  0x35   : > { %1316 = vmatpush3.bf16.msra.mxu0 %v1494_v9  ;;  %1332 = vmatpush3.bf16.msra.mxu1 %v1495_v12  ;;  %v562_v54 = vor.u32 %v561_v46, %v558_v45  ;;  %v654_v2 = vld [vmem:[%s1804_s13] sm:$0xc]  ;;  %v1521_v4 = vld [vmem:[#allocation2 + $0xf4] sm:$0xff]   ;;  %v1873_v6 = vld [vmem:[%s1804_s13 + $0x8] ss:$0 sps:$4 sm:$0x77]   ;;  %s1909_s5 = scalar_lea.hbm %s2023_s2, %s1254_s23 }
  0x36   : > { %1317 = vmatprep.subr.bf16.mxu0 %v1688_v0  ;;  %1333 = vmatprep.subr.bf16.mxu1 %v1688_v0  ;;  %v274_v27 = vsel %vm262_vm2, %v269_v23, %v273_v24  ;;  %v1219_v5 = vcombine.low %v654_v2, %v1809_v11  ;;  %v1522_v7 = vld [vmem:[#allocation2 + $0xc0] sm:$0xff]   ;;  %v1523_v8 = vld [vmem:[#allocation2 + $0xec] sm:$0xff]   ;;  %v782_v12 = vshrl.u32 %v1873_v6, 16  ;;  %v1524_v14 = vld [vmem:[#allocation2 + $0xb8] sm:$0xff]   ;;  %vm772_vm7 = vsmask.f32 5376 }
  0x37   : > { %v571_v61 = vsel %vm554_vm5, %v562_v54, %v570_v55  ;;  %v1526_v20 = vld [vmem:[#allocation2 + $0xb0] sm:$0xff]   ;;  %v1527_v23 = vld [vmem:[#allocation2 + $0xdc] sm:$0xff]   ;;  %v889_v35 = vrot.slane %v1235_v59, 3  ;;  %s209_s27 = scalar_lea.vmem [#allocation5], %s1185_s22  ;;  %s1005_s6 = scalar_lea.sflag [#allocation4], %s1902_s14 }
  0x38   : > { %v774_v9 = vshrl.u32 %v1219_v5, 16  ;;  %v777_v10 = vshll.u32 %v1219_v5, 16  ;;  %v784_v18 = vrot.slane %v782_v12, 2  ;;  %v1529_v24 = vld [vmem:[#allocation2 + $0x130] ss:$0 sps:$4 sm:$0xff]   ;;  %v1533_v32 = vld [vmem:[#allocation2 + $0x118] sm:$0xff]  }
  0x39   : > { %1318 = vmatpush3.bf16.msra.mxu0 %v1496_v15  ;;  %1334 = vmatpush3.bf16.msra.mxu1 %v1497_v19  ;;  %v1525_v15 = vld [vmem:[#allocation2 + $0xe4] sm:$0xff]   ;;  %s1026_s28 = sshll.u32 %s209_s27, 4  ;;  %s1690_s8 = smov [#allocation5]   ;;  %s1911_s28 = int_to_ptr.vmem [resolvable:$true] %s1026_s28 }
  0x3a   : > { %1319 = vmatprep.subr.bf16.mxu0 %v1688_v0  ;;  %1335 = vmatprep.subr.bf16.mxu1 %v1688_v0  ;;  %v776_v16 = vrot.slane %v774_v9, 2  ;;  %v779_v17 = vrot.slane %v777_v10, 3  ;;  %s1563_s7 = scalar_lea.vmem %s1911_s28, 128  ;;  %s1567_s9 = sshll.u32 %s1690_s8, 4  ;;  %s1568_s9 = int_to_ptr.vmem [resolvable:$false] %s1567_s9 }
  0x3b   : > { %p1564_p8 = scmp.ne.s32.totalorder %s1911_s28, %s1563_s7  ;;  %s1569_s10 = scalar_lea.vmem %s1568_s9, 256 }
  0x3c   : > { %v780_v25 = vor.u32 %v779_v17, %v776_v16  ;;  %p1570_p11 = scmp.lt.s32.totalorder %s1911_s28, %s1568_s9  ;;  %p1571_p12 = scmp.lt.s32.totalorder %s1569_s10, %s1563_s7 }
  0x3d   : > { %1320 = vmatpush3.bf16.msra.mxu0 %v1498_v21  ;;  %1336 = vmatpush3.bf16.msra.mxu1 %v1499_v22  ;;  %v671_v21 = vrot.slane %v1219_v5, 2  ;;  %v672_v22 = vrot.slane %v1836_v33, 2  ;;  %v1534_v33 = vld [vmem:[#allocation2 + $0x110] sm:$0xff]   ;;  %p1565_p9 = pnand %p1564_p8, %p1760_p5 }
  0x3e   : > { %1341 = vmatprep.subr.bf16.mxu0 %v1688_v0  ;;  %1357 = vmatprep.subr.bf16.mxu1 %v1688_v0  ;;  %p1572_p13 = por %p1571_p12, %p1570_p11 }
  0x3f   : > { %p1566_p10 = pneg %p1565_p9 }
  0x40   : > { %1322 = vmatmul.mubr.msk.bf16.vlgmr.msra.gmra.mxu0 %vm308_vm3, %v274_v27  ;;  %1338 = vmatmul.mubr.msk.bf16.vlgmr.msra.gmra.mxu1 %vm308_vm3, %v1187_v13  ;;  %v785_v13 = vshll.u32 %v1873_v6, 16  ;;  %v673_v27 = vsel %vm670_vm6, %v671_v21, %v672_v22 }
  0x41   : > { %1342 = vmatpush3.bf16.msra.mxu0 %v493_v28  ;;  %1358 = vmatpush3.bf16.msra.mxu1 %v609_v29  ;;  %v929_v28 = vsel %vm312_vm1, %v1529_v24, 0  ;;  %p1573_p0 = pnand %p1572_p13, %p1566_p10 }
  0x42   : > { %1343 = vmatprep.subr.bf16.mxu0 %v1688_v0  ;;  %1359 = vmatprep.subr.bf16.mxu1 %v1688_v0  ;;  %v787_v19 = vrot.slane %v785_v13, 3 }
  0x43   : > { %1353 = vmatprep.mubr.msk.bf16.mxu0 %vm1689_vm0, %v1688_v0  ;;  %1369 = vmatprep.mubr.msk.bf16.mxu1 %vm1689_vm0, %v1688_v0 }
  0x44   : > { %v788_v26 = vor.u32 %v787_v19, %v784_v18 }
  0x45   : > { %1344 = vmatpush3.bf16.msra.mxu0 %v1504_v30  ;;  %1360 = vmatpush3.bf16.msra.mxu1 %v1505_v31  ;;  %v1531_v30 = vld [vmem:[#allocation2 + $0x128] sm:$0xff]   ;;  %v1532_v31 = vld [vmem:[#allocation2 + $0x120] sm:$0xff]  }
  0x46   : > { %1345 = vmatprep.subr.bf16.mxu0 %v1688_v0  ;;  %1361 = vmatprep.subr.bf16.mxu1 %v1688_v0  ;;  %v789_v29 = vsel %vm772_vm7, %v780_v25, %v788_v26 }
  0x49   : > { %1346 = vmatpush3.bf16.msra.mxu0 %v1506_v34  ;;  %1362 = vmatpush3.bf16.msra.mxu1 %v1507_v36  ;;  %v1535_v34 = vld [vmem:[#allocation2 + $0x108] sm:$0xff]   ;;  %v890_v36 = vrot.slane %v1873_v6, 3 }
  0x4a   : > { %1347 = vmatprep.subr.bf16.mxu0 %v1688_v0  ;;  %1363 = vmatprep.subr.bf16.mxu1 %v1688_v0 }
  0x4d   : > { %1348 = vmatpush3.bf16.msra.mxu0 %v1508_v37  ;;  %1364 = vmatpush3.bf16.msra.mxu1 %v1509_v38  ;;  %v891_v37 = vsel %vm888_vm8, %v889_v35, %v890_v36 }
  0x4e   : > { %1349 = vmatprep.subr.bf16.mxu0 %v1688_v0  ;;  %1365 = vmatprep.subr.bf16.mxu1 %v1688_v0 }
  0x51   : > { %1350 = vmatpush3.bf16.msra.mxu0 %v1510_v43  ;;  %1366 = vmatpush3.bf16.msra.mxu1 %v1511_v44 }
  0x52   : > { %1351 = vmatprep.subr.bf16.mxu0 %v1688_v0  ;;  %1367 = vmatprep.subr.bf16.mxu1 %v1688_v0 }
  0x55   : > { %1352 = vmatpush3.bf16.msra.mxu0 %v1512_v49  ;;  %1368 = vmatpush3.bf16.msra.mxu1 %v1513_v50 }
  0x56   : > { %1373 = vmatprep.subr.bf16.mxu0 %v1688_v0  ;;  %1389 = vmatprep.subr.bf16.mxu1 %v1688_v0 }
  0x58   : > { %1354 = vmatmul.mubr.msk.bf16.vlgmr.msra.gmra.mxu0 %vm308_vm3, %v455_v58  ;;  %1370 = vmatmul.mubr.msk.bf16.vlgmr.msra.gmra.mxu1 %vm308_vm3, %v571_v61 }
  0x59   : > { %1374 = vmatpush3.bf16.msra.mxu0 %v711_v60  ;;  %1390 = vmatpush3.bf16.msra.mxu1 %v827_v62 }
  0x5a   : > { %1375 = vmatprep.subr.bf16.mxu0 %v1688_v0  ;;  %1391 = vmatprep.subr.bf16.mxu1 %v1688_v0 }
  0x5b   : > { %1385 = vmatprep.mubr.msk.bf16.mxu0 %vm1689_vm0, %v1688_v0  ;;  %1401 = vmatprep.mubr.msk.bf16.mxu1 %vm1689_vm0, %v1688_v0 }
  0x5d   : > { %1376 = vmatpush3.bf16.msra.mxu0 %v1518_v63  ;;  %1392 = vmatpush3.bf16.msra.mxu1 %v1519_v1 }
  0x5e   : > { %1377 = vmatprep.subr.bf16.mxu0 %v1688_v0  ;;  %1393 = vmatprep.subr.bf16.mxu1 %v1688_v0 }
  0x61   : > { %1378 = vmatpush3.bf16.msra.mxu0 %v1520_v3  ;;  %1394 = vmatpush3.bf16.msra.mxu1 %v1521_v4 }
  0x62   : > { %1379 = vmatprep.subr.bf16.mxu0 %v1688_v0  ;;  %1395 = vmatprep.subr.bf16.mxu1 %v1688_v0 }
  0x65   : > { %1380 = vmatpush3.bf16.msra.mxu0 %v1522_v7  ;;  %1396 = vmatpush3.bf16.msra.mxu1 %v1523_v8 }
  0x66   : > { %1381 = vmatprep.subr.bf16.mxu0 %v1688_v0  ;;  %1397 = vmatprep.subr.bf16.mxu1 %v1688_v0 }
  0x69   : > { %1382 = vmatpush3.bf16.msra.mxu0 %v1524_v14  ;;  %1398 = vmatpush3.bf16.msra.mxu1 %v1525_v15 }
  0x6a   : > { %1383 = vmatprep.subr.bf16.mxu0 %v1688_v0  ;;  %1399 = vmatprep.subr.bf16.mxu1 %v1688_v0 }
  0x6d   : > { %1384 = vmatpush3.bf16.msra.mxu0 %v1526_v20  ;;  %1400 = vmatpush3.bf16.msra.mxu1 %v1527_v23 }
  0x6e   : > { %1405 = vmatprep.subr.bf16.mxu0 %v1688_v0 }
  0x70   : > { %1386 = vmatmul.mubr.msk.bf16.vlgmr.msra.gmra.mxu0 %vm308_vm3, %v673_v27  ;;  %1402 = vmatmul.mubr.msk.bf16.vlgmr.msra.gmra.mxu1 %vm308_vm3, %v789_v29 }
  0x71   : > { %1406 = vmatpush3.bf16.msra.mxu0 %v929_v28  ;;  %1417 = vmatprep.mubr.msk.bf16.mxu0 %vm1689_vm0, %v1688_v0 }
  0x72   : > { %1407 = vmatprep.subr.bf16.mxu0 %v1688_v0 }
  0x75   : > { %1408 = vmatpush3.bf16.msra.mxu0 %v1531_v30 }
  0x76   : > { %1409 = vmatprep.subr.bf16.mxu0 %v1688_v0 }
  0x79   : > { %1410 = vmatpush3.bf16.msra.mxu0 %v1532_v31 }
  0x7a   : > { %1411 = vmatprep.subr.bf16.mxu0 %v1688_v0 }
  0x7d   : > { %1412 = vmatpush3.bf16.msra.mxu0 %v1533_v32 }
  0x7e   : > { %1413 = vmatprep.subr.bf16.mxu0 %v1688_v0 }
  0x81   : > { %1414 = vmatpush3.bf16.msra.mxu0 %v1534_v33 }
  0x82   : > { %1415 = vmatprep.subr.bf16.mxu0 %v1688_v0 }
  0x85   : > { %1416 = vmatpush3.bf16.msra.mxu0 %v1535_v34 }
  0x88   : > { %1418 = vmatmul.mubr.msk.bf16.vlgmr.msra.gmra.mxu0 %vm308_vm3, %v891_v37 }
 0x100   : > { %v350_v38 = vpop.f32.mrf.mxu0  ;;  %v429_v39 = vpop.f32.mrf.mxu1 }
 0x101   : > { %v430_v40 = vadd.f32 %v429_v39, %v350_v38 }
 0x102   : > { %v1323_v41 = vpop.f32.mrf.mxu0  ;;  %v1339_v42 = vpop.f32.mrf.mxu1 }
 0x104   : > { %v353_v43 = vpop.f32.mrf.mxu0  ;;  %v432_v44 = vpop.f32.mrf.mxu1 }
 0x105   : > { %v433_v61 = vadd.f32 %v432_v44, %v353_v43 }
 0x106   : > { %v1324_v45 = vpop.f32.mrf.mxu0  ;;  %v1340_v46 = vpop.f32.mrf.mxu1 }
 0x118   : > { %v529_v11 = vpop.f32.mrf.mxu0  ;;  %v645_v47 = vpop.f32.mrf.mxu1 }
 0x119   : > { %v536_v62 = vadd.f32 %v529_v11, %v430_v40 }
 0x11a   : > { %v1355_v48 = vpop.f32.mrf.mxu0  ;;  %v1371_v49 = vpop.f32.mrf.mxu1 }
 0x11b   : > { %v652_v1 = vadd.f32 %v645_v47, %v536_v62 }
 0x11c   : > { %v532_v50 = vpop.f32.mrf.mxu0  ;;  %v648_v0 = vpop.f32.mrf.mxu1 }
 0x11d   : > { %v537_v63 = vadd.f32 %v532_v50, %v433_v61 }
 0x11e   : > { %v1356_v51 = vpop.f32.mrf.mxu0  ;;  %v1372_v52 = vpop.f32.mrf.mxu1 }
 0x11f   : > { %v653_v2 = vadd.f32 %v648_v0, %v537_v63 }
 0x130   : > { %v747_v53 = vpop.f32.mrf.mxu0  ;;  %v863_v54 = vpop.f32.mrf.mxu1 }
 0x131   : > { %v754_v3 = vadd.f32 %v747_v53, %v652_v1 }
 0x132   : > { %v1387_v55 = vpop.f32.mrf.mxu0  ;;  %v1403_v56 = vpop.f32.mrf.mxu1 }
 0x133   : > { %v870_v6 = vadd.f32 %v863_v54, %v754_v3 }
 0x134   : > { %v750_v57 = vpop.f32.mrf.mxu0  ;;  %v866_v58 = vpop.f32.mrf.mxu1 }
 0x135   : > { %v755_v4 = vadd.f32 %v750_v57, %v653_v2 }
 0x136   : > { %v1388_v59 = vpop.f32.mrf.mxu0  ;;  %v1404_v60 = vpop.f32.mrf.mxu1 }
 0x137   : > { %v871_v8 = vadd.f32 %v866_v58, %v755_v4 }
 0x148   : > { %v965_v5 = vpop.f32.mrf.mxu0 }
 0x149   : > { %v972_v9 = vadd.f32 %v965_v5, %v870_v6 }
 0x14a   : > { %v1419_v7 = vpop.f32.mrf.mxu0 }
 0x14b   : > { %v992_v14 = vmul.f32 %v972_v9, %v972_v9 }
 0x14c   : > { %v968_v10 = vpop.f32.mrf.mxu0 }
 0x14d   : > { %v973_v12 = vadd.f32 %v968_v10, %v871_v8 }
 0x14e   : > { %v1420_v13 = vpop.f32.mrf.mxu0 }
 0x14f   : > { %v1258_v15 = vpack.c.bf16 %v973_v12, %v972_v9  ;;  %v984_v16 = vadd.f32 %v973_v12, %v972_v9  ;;  %v993_v17 = vmul.f32 %v973_v12, %v973_v12 }
 0x151   : > { %1259 = vst [vmem:[%s209_s27] sm:$0xff] %v1258_v15   ;;  %v985_v18 = vrot.slane %v984_v16, 4  ;;  %v994_v19 = vadd.f32 %v993_v17, %v992_v14 }
 0x152   : > { %1576 = shalt.err (!%p1573_p0)
}
 0x153   : > { %s1577_s11 = scalar_lea.hbm %s1909_s5, 128  ;;  %s1581_s22 = scalar_lea.hbm %s2023_s2, 256 }
 0x154   : > { %p1578_p1 = scmp.ne.s32.totalorder %s1909_s5, %s1577_s11  ;;  %p1582_p4 = scmp.lt.s32.totalorder %s1909_s5, %s2023_s2 }
 0x155   : > { %p1583_p7 = scmp.lt.s32.totalorder %s1581_s22, %s1577_s11 }
 0x156   : > { %p1579_p2 = pnand %p1578_p1, %p1760_p5 }
 0x157   : > { %p1584_p6 = por %p1583_p7, %p1582_p4 }
 0x158   : > { %p1580_p3 = pneg %p1579_p2 }
 0x15a   : > { %p1585_p8 = pnand %p1584_p6, %p1580_p3 }
 0x15c   : > { %1588 = shalt.err (!%p1585_p8)
}
 0x15d   : > { %s1691_s29 = smov 64   ;;  %s1692_s30 = smov 4   ;;  %v986_v20 = vadd.f32 %v985_v18, %v984_v16  ;;  %v995_v21 = vrot.slane %v994_v19, 4 }
 0x15e   : > { %1426 = dma.vmem_to_hbm [thread:$0]  (%p1760_p5), %s1911_s28, 128, %s1909_s5, %s1005_s6, %s1691_s29, %s1691_s29, %s1692_s30  }
 0x15f   : > { %v987_v22 = vrot.slane %v986_v20, 2  ;;  %v996_v23 = vadd.f32 %v995_v21, %v994_v19  ;;  %s1009_s7 = sand.u32 1, %s1741_s19   ;;  %s1248_s8 = sshll.u32 %s1741_s19, 4 }
 0x160   : > { %s215_s9 = scalar_lea.vmem [#allocation6], %s1902_s14  ;;  %s221_s11 = scalar_lea.vmem [#allocation8], %s1902_s14 }
 0x161   : > { %v988_v24 = vadd.f32 %v987_v22, %v986_v20  ;;  %v997_v25 = vrot.slane %v996_v23, 2  ;;  %s1042_s10 = sshll.u32 %s215_s9, 4  ;;  %s1055_s12 = sshll.u32 %s221_s11, 4  ;;  %s1947_s10 = int_to_ptr.vmem [resolvable:$true] %s1042_s10  ;;  %s1954_s12 = int_to_ptr.vmem [resolvable:$true] %s1055_s12 }
 0x162   : > { %s1945_s5 = scalar_lea.hbm %s2024_s3, %s1248_s8  ;;  %s1952_s22 = scalar_lea.hbm %s2025_s4, %s1248_s8 }
 0x163   : > { %v989_v26 = vrot.slane %v988_v24, 1  ;;  %v998_v27 = vadd.f32 %v997_v25, %v996_v23  ;;  %s1956_s23 = scalar_lea.sflag [#allocation7], %s1009_s7  ;;  %s1589_s27 = scalar_lea.vmem %s1947_s10, 16 }
 0x164   : > { %p1590_p9 = scmp.ne.s32.totalorder %s1947_s10, %s1589_s27  ;;  %s1693_s29 = smov [#allocation6]  }
 0x165   : > { %v999_v28 = vrot.slane %v998_v27, 1  ;;  %v990_v29 = vadd.f32 %v989_v26, %v988_v24  ;;  %s1593_s30 = sshll.u32 %s1693_s29, 4  ;;  %s1594_s30 = int_to_ptr.vmem [resolvable:$false] %s1593_s30 }
 0x166   : > { %p1591_p10 = pnand %p1590_p9, %p1760_p5  ;;  %s1595_s13 = scalar_lea.vmem %s1594_s30, 32 }
 0x167   : > { %1002 = vst [vmem:[%s215_s9] sm:$0x1] %v990_v29  ;;  %v1000_v30 = vadd.f32 %v999_v28, %v998_v27  ;;  %p1596_p12 = scmp.lt.s32.totalorder %s1947_s10, %s1594_s30  ;;  %p1597_p13 = scmp.lt.s32.totalorder %s1595_s13, %s1589_s27 }
 0x168   : > { %p1592_p11 = pneg %p1591_p10 }
 0x169   : > { %p1598_p0 = por %p1597_p13, %p1596_p12 }
 0x16b   : > { %p1599_p1 = pnand %p1598_p0, %p1592_p11 }
 0x16d   : > { %1602 = shalt.err (!%p1599_p1)
}
 0x16e   : > { %s1603_s7 = scalar_lea.hbm %s1945_s5, 16  ;;  %s1607_s28 = scalar_lea.hbm %s2024_s3, 32 }
 0x16f   : > { %p1604_p2 = scmp.ne.s32.totalorder %s1945_s5, %s1603_s7  ;;  %p1608_p7 = scmp.lt.s32.totalorder %s1945_s5, %s2024_s3 }
 0x170   : > { %p1609_p6 = scmp.lt.s32.totalorder %s1607_s28, %s1603_s7 }
 0x171   : > { %p1605_p3 = pnand %p1604_p2, %p1760_p5 }
 0x172   : > { %p1610_p8 = por %p1609_p6, %p1608_p7 }
 0x173   : > { %p1606_p4 = pneg %p1605_p3 }
 0x175   : > { %p1611_p9 = pnand %p1610_p8, %p1606_p4 }
 0x177   : > { %1614 = shalt.err (!%p1611_p9)
}
 0x178   : > { %1427 = dma.vmem_to_hbm [thread:$0]  (%p1760_p5), %s1947_s10, 16, %s1945_s5, %s1956_s23   ;;  %1003 = vst [vmem:[%s221_s11] sm:$0x1] %v1000_v30 }
 0x179   : > { %s1615_s27 = scalar_lea.vmem %s1954_s12, 16  ;;  %s1694_s29 = smov [#allocation8]  }
 0x17a   : > { %p1616_p10 = scmp.ne.s32.totalorder %s1954_s12, %s1615_s27  ;;  %s1619_s30 = sshll.u32 %s1694_s29, 4  ;;  %s1620_s30 = int_to_ptr.vmem [resolvable:$false] %s1619_s30 }
 0x17b   : > { %s1621_s13 = scalar_lea.vmem %s1620_s30, 32  ;;  %p1622_p13 = scmp.lt.s32.totalorder %s1954_s12, %s1620_s30 }
 0x17c   : > { %p1617_p11 = pnand %p1616_p10, %p1760_p5  ;;  %p1623_p0 = scmp.lt.s32.totalorder %s1621_s13, %s1615_s27 }
 0x17e   : > { %p1618_p12 = pneg %p1617_p11  ;;  %p1624_p1 = por %p1623_p0, %p1622_p13 }
 0x180   : > { %p1625_p2 = pnand %p1624_p1, %p1618_p12 }
 0x182   : > { %1628 = shalt.err (!%p1625_p2)
}
 0x183   : > { %s1629_s14 = scalar_lea.hbm %s1952_s22, 16  ;;  %s1633_s5 = scalar_lea.hbm %s2025_s4, 32 }
 0x184   : > { %p1630_p3 = scmp.ne.s32.totalorder %s1952_s22, %s1629_s14  ;;  %p1634_p6 = scmp.lt.s32.totalorder %s1952_s22, %s2025_s4 }
 0x185   : > { %p1635_p8 = scmp.lt.s32.totalorder %s1633_s5, %s1629_s14 }
 0x186   : > { %p1631_p4 = pnand %p1630_p3, %p1760_p5 }
 0x187   : > { %p1636_p9 = por %p1635_p8, %p1634_p6 }
 0x188   : > { %p1632_p7 = pneg %p1631_p4 }
 0x18a   : > { %p1637_p10 = pnand %p1636_p9, %p1632_p7 }
 0x18c   : > { %1640 = shalt.err (!%p1637_p10)
}
 0x18d   : > { %1428 = dma.vmem_to_hbm [thread:$0]  (%p1760_p5), %s1954_s12, 16, %s1952_s22, %s1956_s23  }
 0x18e PF: > { %p1448_p11 = scmp.ge.s32.totalorder %s1683_s18, 2  ;;  %s1067_s9 = sand.u32 1, %s1671_s15  }
 0x18f   : > { %p2029_p12 = scmp.ne.s32.totalorder %s2027_s26, 0  ;;  %s1068_s28 = scalar_lea.sflag [#allocation4], %s1067_s9 }
 0x191   : > { %p1437_p13 = pnand %p1448_p11, %p2029_p12 }
 0x193   : > { %p1438_p0 = pneg %p1437_p13 }
 0x195   : > { %1662 = dma.done.wait (%p1438_p0), %s1068_s28, 128  }
 0x196   : > { %1664 = vsyncadd (%p1438_p0), %s1068_s28, 4294967168  ;;  %s1076_s19 = sand.u32 1, %s1179_s20  }
 0x197   : > { %s1077_s25 = scalar_lea.sflag [#allocation7], %s1076_s19 }
 0x198   : > { %1666 = dma.done.wait (%p1438_p0), %s1077_s25, 32  }
 0x199   : > { %1668 = vsyncadd (%p1438_p0), %s1077_s25, 4294967264  ;;  %p19_p5 = scmp.ge.s32.totalorder %s1745_s21, 4   ;;  %s2030_s15 = smov %s1675_s16 }
 0x19a   : > { %s2031_s16 = smov %s1679_s17  ;;  %s2032_s17 = smov %s1758_s24 }
 0x19b   : > { %s2033_s18 = smov %s1745_s21  ;;  %21 = sbr.rel (!%p19_p5) target bundleno = 6 (0x6), region = 106 }
 0x1a0   :  { %1089 = vsyncpa [#allocation3], 1 }
 0x1a1   :  { %1091 = vsyncpa [#allocation3 + $0x1], 1 }
 0x1a2   :  { %1092 = vsyncpa [#allocation4], 1 }
 0x1a3   :  { %1094 = vsyncpa [#allocation4 + $0x1], 1 }
 0x1a4   :  { %1095 = vsyncpa [#allocation7], 1 }
 0x1a5   :  { %1097 = vsyncpa [#allocation7 + $0x1], 1 }

</bundles_post_ra>
